<compile_context>
chip_gen: v7x
topology: tpu7x:2x2x1
jax: 0.10.0
libtpu: 0.0.40
codegen_flags: <defaults>
</compile_context>

<pallas_src>
import functools
import math

import jax
import jax.numpy as jnp
from jax.experimental import pallas as pl
from jax.experimental.pallas import tpu as pltpu


def _round_up(x, m):
    return ((x + m - 1) // m) * m


def _fourier_packed_kernel(x_ref, b2_ref, o_ref, *, f_dim, enc_dim):
    # x_ref:  (TMg, G*pos_dim)   -- G logical rows packed per sublane row
    # b2_ref: (G*pos_dim, G*f_dim) = kron(I_G, [B | B])   (G*f_dim == 128)
    # o_ref:  (TMg, G*f_dim)     -- packed, lane-dense output tile
    proj = jnp.dot(x_ref[...], b2_ref[...],
                   preferred_element_type=jnp.float32)
    # Within each f_dim-wide lane group the first enc_dim lanes take sin and
    # the second enc_dim lanes take cos.  cos(x) = sin(x + pi/2), so add a
    # per-lane phase (VPU) and run ONE sin (EUP) over the full 128-lane vreg.
    lane = jax.lax.broadcasted_iota(jnp.int32, (1, proj.shape[-1]), 1)
    phase = jnp.where((lane % f_dim) >= enc_dim,
                      jnp.float32(jnp.pi / 2), jnp.float32(0.0))
    out = jnp.sin(proj + phase)
    o_ref[...] = out.astype(o_ref.dtype)   # single full-tile, unmasked store


def _fourier_rowtile_kernel(x_ref, b_ref, o_ref):
    # General fallback: x_ref (TM, pos_dim), b_ref (pos_dim, enc_dim),
    # o_ref (TM, 2*enc_dim).  One full-tile store.
    proj = jnp.dot(x_ref[...], b_ref[...],
                   preferred_element_type=jnp.float32)
    o_ref[...] = jnp.concatenate(
        [jnp.sin(proj), jnp.cos(proj)], axis=-1).astype(o_ref.dtype)


def fourier_features(pos, B, *, tile_rows=8192, out_dtype=None):
    """pos: (..., pos_dim), B: (pos_dim, enc_dim) -> (..., 2*enc_dim)."""
    pos_dim, enc_dim = B.shape
    f_dim = 2 * enc_dim
    assert pos.shape[-1] == pos_dim
    lead = pos.shape[:-1]
    M = math.prod(lead) if lead else 1
    out_dtype = pos.dtype if out_dtype is None else out_dtype

    Bc = B.astype(pos.dtype)               # match torch: B.to(pos.dtype)
    x2d = pos.reshape(M, pos_dim)

    vmem_params = pltpu.CompilerParams(
        dimension_semantics=("parallel",),   # M-tiles are independent
        vmem_limit_bytes=32 * 1024 * 1024,   # explicit budget, safe on v7x
    )

    if f_dim <= 128 and 128 % f_dim == 0:
        # ---- lane-dense packed path ----
        G = 128 // f_dim                    # logical rows per packed row
        row_align = 8 * G                   # keeps packed sublane dim % 8 == 0
        tm = max(row_align, min(tile_rows, _round_up(M, row_align)))
        tm = _round_up(tm, row_align)       # logical rows per grid step
        n_tiles = pl.cdiv(M, tm)
        m_pad = n_tiles * tm
        if m_pad > M:
            x2d = jnp.pad(x2d, ((0, m_pad - M), (0, 0)))

        # Free row-major re-interpretations (no data movement):
        x_packed = x2d.reshape(m_pad // G, G * pos_dim)
        bb = jnp.concatenate([Bc, Bc], axis=1)            # (pos_dim, f_dim)
        b2 = jnp.kron(jnp.eye(G, dtype=bb.dtype), bb)     # (G*pos_dim, 128)

        tmg = tm // G
        kernel = functools.partial(_fourier_packed_kernel,
                                   f_dim=f_dim, enc_dim=enc_dim)
        out_packed = pl.pallas_call(
            kernel,
            out_shape=jax.ShapeDtypeStruct((m_pad // G, G * f_dim), out_dtype),
            grid=(n_tiles,),
            in_specs=[
                pl.BlockSpec((tmg, G * pos_dim), lambda i: (i, 0)),
                pl.BlockSpec((G * pos_dim, G * f_dim), lambda i: (0, 0)),
            ],
            out_specs=pl.BlockSpec((tmg, G * f_dim), lambda i: (i, 0)),
            compiler_params=vmem_params,
        )(x_packed, b2)
        out2d = out_packed.reshape(m_pad, f_dim)[:M]
    else:
        # ---- general fallback path (still tiled, single store per tile) ----
        tm = max(8, min(tile_rows, _round_up(M, 8)))
        tm = _round_up(tm, 8)
        n_tiles = pl.cdiv(M, tm)
        m_pad = n_tiles * tm
        if m_pad > M:
            x2d = jnp.pad(x2d, ((0, m_pad - M), (0, 0)))
        out2d_p = pl.pallas_call(
            _fourier_rowtile_kernel,
            out_shape=jax.ShapeDtypeStruct((m_pad, f_dim), out_dtype),
            grid=(n_tiles,),
            in_specs=[
                pl.BlockSpec((tm, pos_dim), lambda i: (i, 0)),
                pl.BlockSpec((pos_dim, enc_dim), lambda i: (0, 0)),
            ],
            out_specs=pl.BlockSpec((tm, f_dim), lambda i: (i, 0)),
            compiler_params=vmem_params,
        )(x2d, Bc)
        out2d = out2d_p[:M]

    return out2d.reshape(*lead, f_dim)


def fourier_features_ref(pos, B):
    proj = jnp.matmul(pos, B.astype(pos.dtype))
    return jnp.concatenate([jnp.sin(proj), jnp.cos(proj)], axis=-1)


if __name__ == "__main__":
    # Module config consistent with the forward: pos_dim=4, f_dim=32, sigma=10
    pos_dim = 4
    f_dim = 32
    sigma = 10.0
    enc_dim = f_dim // 2

    key = jax.random.PRNGKey(0)
    k_b, k_pos, k_pos2 = jax.random.split(key, 3)

    # Deterministic synthetic "B" parameter: randn(pos_dim, enc_dim) * sigma
    B = jax.random.normal(k_b, (pos_dim, enc_dim), dtype=jnp.float32) * sigma

    # Primary check: pos (batch=2, seq=8, pos_dim=4)  -> single tile
    pos = jax.random.normal(k_pos, (2, 8, pos_dim), dtype=jnp.float32)
    out = jax.block_until_ready(fourier_features(pos, B))
    ref = fourier_features_ref(pos, B)
    assert out.shape == (2, 8, f_dim), out.shape
    assert jnp.allclose(out, ref, atol=1e-4, rtol=1e-4), "mismatch vs reference"

    # Secondary check: multi-tile grid + ragged tail (M=300, 64-row tiles)
    pos2 = jax.random.normal(k_pos2, (6, 50, pos_dim), dtype=jnp.float32)
    out2 = jax.block_until_ready(fourier_features(pos2, B, tile_rows=64))
    ref2 = fourier_features_ref(pos2, B)
    assert out2.shape == (6, 50, f_dim), out2.shape
    assert jnp.allclose(out2, ref2, atol=1e-4, rtol=1e-4), "mismatch (tiled)"

    print("KERNEL_OK")
</pallas_src>

<mosaic_0001>
module attributes {stable_mosaic.version = 11 : i64} {
  func.func @_fourier_packed_kernel(%arg0: i32, %arg1: memref<8x16xf32, #tpu.memory_space<vmem>>, %arg2: memref<16x128xf32, #tpu.memory_space<vmem>>, %arg3: memref<8x128xf32, #tpu.memory_space<vmem>>) attributes {dimension_semantics = [#tpu.dimension_semantics<parallel>], iteration_bounds = array<i64: 1>, scalar_prefetch = 0 : i64, scratch_operands = 0 : i64, tpu.core_type = #tpu.core_type<tc>, window_params = [{transform_indices = @transform_0, window_bounds = array<i64: 8, 16>}, {pipeline_mode = #tpu.pipeline_mode<synchronous>, transform_indices = @transform_1, window_bounds = array<i64: 16, 128>}, {transform_indices = @transform_2, window_bounds = array<i64: 8, 128>}]} {
    %c0 = arith.constant 0 : index
    %c0_0 = arith.constant 0 : index
    %0 = vector.load %arg1[%c0, %c0_0] : memref<8x16xf32, #tpu.memory_space<vmem>>, vector<8x16xf32>
    %c0_1 = arith.constant 0 : index
    %c0_2 = arith.constant 0 : index
    %1 = vector.load %arg2[%c0_1, %c0_2] : memref<16x128xf32, #tpu.memory_space<vmem>>, vector<16x128xf32>
    %cst = arith.constant dense<0.000000e+00> : vector<8x128xf32>
    %2 = tpu.matmul %0, %1, %cst {dimension_numbers = #tpu.dot_dimension_numbers<[1], [0], [0], [1], [0, 0, 1, 1], [], []>} : vector<8x16xf32>, vector<16x128xf32>, vector<8x128xf32> -> vector<8x128xf32>
    %3 = tpu.iota {dimensions = array<i32: 1>} : vector<1x128xi32>
    %c32_i32 = arith.constant 32 : i32
    %c0_i32 = arith.constant 0 : i32
    %4 = arith.cmpi eq, %c32_i32, %c0_i32 : i32
    %c1_i32 = arith.constant 1 : i32
    %5 = arith.select %4, %c1_i32, %c32_i32 : i32
    %6 = vector.broadcast %5 : i32 to vector<1x128xi32>
    %7 = arith.remsi %3, %6 : vector<1x128xi32>
    %c0_i32_3 = arith.constant 0 : i32
    %8 = vector.broadcast %c0_i32_3 : i32 to vector<1x128xi32>
    %9 = arith.cmpi ne, %7, %8 : vector<1x128xi32>
    %c0_i32_4 = arith.constant 0 : i32
    %10 = vector.broadcast %c0_i32_4 : i32 to vector<1x128xi32>
    %11 = arith.cmpi slt, %7, %10 : vector<1x128xi32>
    %c0_i32_5 = arith.constant 0 : i32
    %12 = arith.cmpi slt, %5, %c0_i32_5 : i32
    %13 = vector.broadcast %12 : i1 to vector<1x128xi1>
    %14 = vector.broadcast %13 : vector<1x128xi1> to vector<1x128xi1>
    %15 = arith.xori %11, %14 : vector<1x128xi1>
    %16 = arith.andi %15, %9 : vector<1x128xi1>
    %17 = vector.broadcast %5 : i32 to vector<1x128xi32>
    %18 = arith.addi %7, %17 : vector<1x128xi32>
    %19 = arith.select %16, %18, %7 : vector<1x128xi1>, vector<1x128xi32>
    %c16_i32 = arith.constant 16 : i32
    %20 = vector.broadcast %c16_i32 : i32 to vector<1x128xi32>
    %21 = arith.cmpi sge, %19, %20 : vector<1x128xi32>
    %cst_6 = arith.constant 1.57079637 : f32
    %cst_7 = arith.constant 0.000000e+00 : f32
    %22 = vector.broadcast %cst_6 : f32 to vector<1x128xf32>
    %23 = vector.broadcast %cst_7 : f32 to vector<1x128xf32>
    %24 = arith.select %21, %22, %23 : vector<1x128xi1>, vector<1x128xf32>
    %25 = vector.broadcast %24 : vector<1x128xf32> to vector<8x128xf32>
    %26 = arith.addf %2, %25 : vector<8x128xf32>
    %27 = math.sin %26 : vector<8x128xf32>
    %c0_8 = arith.constant 0 : index
    %c0_9 = arith.constant 0 : index
    %28 = vector.load %arg3[%c0_8, %c0_9] : memref<8x128xf32, #tpu.memory_space<vmem>>, vector<8x128xf32>
    tpu.vector_store %arg3[%c0_8, %c0_9], %27 {strides = array<i32>} : memref<8x128xf32, #tpu.memory_space<vmem>>, vector<8x128xf32>,
    return
  }
  func.func @transform_0(%arg0: i32) -> (i32, i32) {
    %c0_i32 = arith.constant 0 : i32
    %c0_i32_0 = arith.constant 0 : i32
    return %arg0, %c0_i32 : i32, i32
  }
  func.func @transform_1(%arg0: i32) -> (i32, i32) {
    %c0_i32 = arith.constant 0 : i32
    %c0_i32_0 = arith.constant 0 : i32
    %c0_i32_1 = arith.constant 0 : i32
    return %c0_i32, %c0_i32_0 : i32, i32
  }
  func.func @transform_2(%arg0: i32) -> (i32, i32) {
    %c0_i32 = arith.constant 0 : i32
    %c0_i32_0 = arith.constant 0 : i32
    return %arg0, %c0_i32 : i32, i32
  }
}

</mosaic_0001>

<bundles_post_ra>
// kernel: tpu_custom_call.1
= control target key start
LH: loop header
LB: loop body
LE: loop exit
PB: predicated region body
PF: predicated region fallthrough
CT: control target
= control target key end

     0   :  { %7 = vsyncpa [#allocation3], 0  ;;  %s457_s0 = inlined_call_operand.hbm [shape: f32[8,16], index: 0, kind: input, shape index: {}]   ;;  %s458_s1 = inlined_call_operand.hbm [shape: f32[16,128], index: 1, kind: input, shape index: {}]   ;;  %s459_s2 = inlined_call_operand.hbm [shape: f32[8,128], index: 2, kind: output, shape index: {}]  }
   0x1   :  { %8 = vsyncpa [#allocation6], 0 }
   0x2   :  { %9 = vsyncpa [#allocation4], 0  ;;  %s364_s9 = smov [#allocation2]   ;;  %s365_s11 = smov [#allocation5]  }
   0x3   :  { %s16_s10 = sshll.u32 %s364_s9, 4  ;;  %s25_s12 = sshll.u32 %s365_s11, 4  ;;  %s17_s10 = int_to_ptr.vmem [resolvable:$true] %s16_s10  ;;  %s393_s12 = int_to_ptr.vmem [resolvable:$true] %s25_s12 }
   0x4   :  { %s292_s15 = scalar_lea.hbm %s457_s0, 128 }
   0x5   :  { %p293_p0 = scmp.ne.s32.totalorder %s457_s0, %s292_s15  ;;  %p296_p1 = scmp.lt.u32.totalorder %s292_s15, %s457_s0 }
   0x7   :  { %p298_p2 = pnand %p296_p1, %p293_p0 }
   0x9   :  { %301 = shalt.err (!%p298_p2)
}
   0xa   :  { %s302_s20 = scalar_lea.vmem %s17_s10, 128  ;;  %p307_p4 = scmp.lt.s32.totalorder %s17_s10, %s17_s10 }
   0xb   :  { %p303_p3 = scmp.ne.s32.totalorder %s17_s10, %s302_s20  ;;  %p308_p5 = scmp.lt.s32.totalorder %s302_s20, %s302_s20 }
   0xd   :  { %p309_p6 = por %p308_p5, %p307_p4 }
   0xf   :  { %p310_p7 = pnand %p309_p6, %p303_p3 }
  0x11   :  { %313 = shalt.err (!%p310_p7)
}
  0x12   :  { %19 = dma.hbm_to_vmem [thread:$0]  %s457_s0, 128, %s17_s10, [#allocation3]  }
  0x13   :  { %s314_s25 = scalar_lea.hbm %s458_s1, 256 }
  0x14   :  { %p315_p8 = scmp.ne.s32.totalorder %s458_s1, %s314_s25  ;;  %p318_p9 = scmp.lt.u32.totalorder %s314_s25, %s458_s1 }
  0x16   :  { %p320_p10 = pnand %p318_p9, %p315_p8 }
  0x18   :  { %323 = shalt.err (!%p320_p10)
}
  0x19   :  { %s324_s30 = scalar_lea.vmem %s393_s12, 256  ;;  %p329_p12 = scmp.lt.s32.totalorder %s393_s12, %s393_s12 }
  0x1a   :  { %p325_p11 = scmp.ne.s32.totalorder %s393_s12, %s324_s30  ;;  %p330_p13 = scmp.lt.s32.totalorder %s324_s30, %s324_s30 }
  0x1c   :  { %p331_p0 = por %p330_p13, %p329_p12 }
  0x1e   :  { %p332_p1 = pnand %p331_p0, %p325_p11 }
  0x20   :  { %335 = shalt.err (!%p332_p1)
}
  0x21   :  { %s366_s0 = smov 128   ;;  %s367_s3 = smov 8  }
  0x22   :  { %31 = dma.hbm_to_vmem [thread:$0]  %s458_s1, 256, %s393_s12, [#allocation6], %s366_s0, %s366_s0, %s367_s3  }
  0x23   :  { %358 = dma.done.wait [#allocation3], 128  }
  0x24   :  { %359 = vsyncadd [#allocation3], 4294967168 }
  0x25   :  { %360 = dma.done.wait [#allocation6], 256  }
  0x26   :  { %361 = vsyncadd [#allocation6], 4294967040  ;;  %v368_v0 = vmov 0.0|0.0   ;;  %vm369_vm0 = vmmov 0   ;;  %v370_v1 = vmov 0.0   ;;  %v39_v2 = vld [vmem:[#allocation5] sm:$0xff]  ;;  %v41_v6 = vlaneseq }
  0x27   :  { %267 = vmatprep.subr.bf16.mxu0 %v368_v0  ;;  %264 = vmatprep.mubr.msk.f32.mxu0 %vm369_vm0, %v370_v1  ;;  %v40_v3 = vld [vmem:[#allocation5 + $0x8] sm:$0xff]  ;;  %v38_v5 = vld [vmem:[#allocation2] sm:$0xff]  ;;  %vm57_vm1 = vcmask 130048   ;;  %v371_v23 = vmov 683565275   ;;  %s377_s1 = smov [#allocation7]  }
  0x28   :  { %v268_v4 = vpack.c.bf16 %v40_v3, %v39_v2  ;;  %v42_v7 = vand.u32 127, %v41_v6  ;;  %v372_v25 = vmov 2475754826   ;;  %v373_v28 = vmov 2131351028   ;;  %s242_s6 = sshll.u32 %s377_s1, 4  ;;  %s243_s6 = int_to_ptr.vmem [resolvable:$true] %s242_s6 }
  0x29   :  { %v374_v31 = vmov 2102212464   ;;  %v375_v34 = vmov 920167782   ;;  %v376_v37 = vmov 1326507024   ;;  %p341_p3 = scmp.lt.s32.totalorder %s243_s6, %s243_s6 }
  0x2a   :  { %269 = vmatpush3.bf16.msra.mxu0 %v268_v4  ;;  %v47_v8 = vand.u32 31, %v42_v7  ;;  %s336_s7 = scalar_lea.vmem %s243_s6, 128 }
  0x2b   :  { %p337_p2 = scmp.ne.s32.totalorder %s243_s6, %s336_s7  ;;  %p342_p4 = scmp.lt.s32.totalorder %s336_s7, %s336_s7 }
  0x2c   :  { %vm55_vm2 = vcmp.ge.s32.totalorder %v47_v8, 16 }
  0x2d   :  { %265 = vmatmul.mubr.msk.f32.vlgmr.msra.gmra.mrb[0].mxu0 %vm57_vm1, %v38_v5  ;;  %v56_v9 = vsel %vm55_vm2, 1.5707964, %v370_v1  ;;  %p343_p5 = por %p342_p4, %p341_p3 }
  0x2f   :  { %p344_p6 = pnand %p343_p5, %p337_p2 }
 0x100   :  { %v127_v10 = vpop.f32.mrb[0].mxu0 }
 0x101   :  { %v424_v11 = vadd.f32 %v127_v10, %v56_v9  ;;  %v266_v12 = vpop.f32.mrb[1].mxu0 }
 0x103   :  { %v134_v13 = vand.u32 2139095040, %v424_v11  ;;  %v131_v17 = vand.u32 2147483647, %v424_v11  ;;  %vm133_vm10 = vcmp.lt.s32.totalorder %v424_v11, 0  ;;  %vm223_vm15 = vweird.f32 %v424_v11 }
 0x105   :  { %v135_v14 = vshrl.u32 %v134_v13, 23  ;;  %v138_v20 = vand.u32 8388607, %v131_v17  ;;  %vm132_vm11 = vcmp.le.f32.partialorder %v131_v17, 0.7853982 }
 0x107   :  { %v253_v15 = vadd.s32 4294967169, %v135_v14  ;;  %v139_v39 = vor.u32 8388608, %v138_v20 }
 0x109   :  { %v141_v16 = vadd.s32 1, %v253_v15  ;;  %v179_v53 = vshll.u32 %v139_v39, 8 }
 0x10b   :  { %vm142_vm3 = vcmp.gt.s32.totalorder %v141_v16, 0 }
 0x10c   :  { %v143_v18 = vsel %vm142_vm3, %v141_v16, 0 }
 0x10d   :  { %v145_v19 = vand.u32 31, %v143_v18  ;;  %v144_v22 = vshrl.u32 %v143_v18, 5 }
 0x10f   :  { %v146_v21 = vsub.s32 32, %v145_v19  ;;  %v148_v24 = vshll.u32 %v371_v23, %v145_v19  ;;  %v151_v26 = vshll.u32 %v372_v25, %v145_v19  ;;  %v154_v30 = vshll.u32 %v373_v28, %v145_v19 }
 0x110   :  { %v157_v33 = vshll.u32 %v374_v31, %v145_v19  ;;  %v160_v36 = vshll.u32 %v375_v34, %v145_v19  ;;  %vm163_vm4 = vcmp.lt.s32.totalorder %v144_v22, 1  ;;  %vm166_vm5 = vcmp.lt.s32.totalorder %v144_v22, 4 }
 0x111   :  { %v149_v27 = vshrl.u32 %v372_v25, %v146_v21  ;;  %v152_v29 = vshrl.u32 %v373_v28, %v146_v21  ;;  %v155_v32 = vshrl.u32 %v374_v31, %v146_v21  ;;  %v158_v35 = vshrl.u32 %v375_v34, %v146_v21 }
 0x112   :  { %v161_v38 = vshrl.u32 %v376_v37, %v146_v21  ;;  %v147_v48 = vshrl.u32 %v371_v23, %v146_v21  ;;  %vm165_vm6 = vcmp.lt.s32.totalorder %v144_v22, 3  ;;  %vm164_vm7 = vcmp.lt.s32.totalorder %v144_v22, 2 }
 0x113   :  { %v150_v40 = vor.u32 %v149_v27, %v148_v24  ;;  %v153_v41 = vor.u32 %v152_v29, %v151_v26  ;;  %v156_v42 = vor.u32 %v155_v32, %v154_v30  ;;  %v159_v43 = vor.u32 %v158_v35, %v157_v33 }
 0x114   :  { %v162_v44 = vor.u32 %v161_v38, %v160_v36 }
 0x115   :  { %v168_v45 = vsel %vm166_vm5, %v156_v42, 2102212464  ;;  %v171_v46 = vsel %vm163_vm4, %v150_v40, %v153_v41  ;;  %v175_v47 = vsel %vm163_vm4, %v153_v41, %v156_v42  ;;  %v172_v49 = vsel %vm166_vm5, %v159_v43, 920167782 }
 0x116   :  { %v176_v50 = vsel %vm166_vm5, %v162_v44, 1326507024  ;;  %v173_v51 = vsel %vm165_vm6, %v156_v42, %v172_v49  ;;  %v167_v54 = vsel %vm163_vm4, %v147_v48, %v150_v40  ;;  %v169_v55 = vsel %vm165_vm6, %v153_v41, %v168_v45 }
 0x117   :  { %v177_v52 = vsel %vm165_vm6, %v159_v43, %v176_v50  ;;  %v174_v56 = vsel %vm164_vm7, %v171_v46, %v173_v51  ;;  %v170_v62 = vsel %vm164_vm7, %v167_v54, %v169_v55 }
 0x118   :  { %v178_v57 = vsel %vm164_vm7, %v175_v47, %v177_v52  ;;  %v433_v60 = vmul.u32.u64.low %v179_v53, %v174_v56  ;;  %v434_v61 = vmul.u32.u64.high %v179_v53, %v174_v56, %v433_v60  ;;  %v186_v0 = vmul.u32 %v179_v53, %v170_v62 }
 0x119   :  { %v430_v58 = vmul.u32.u64.low %v179_v53, %v178_v57  ;;  %v431_v59 = vmul.u32.u64.high %v179_v53, %v178_v57, %v430_v58 }
 0x11a   :  { %v189_v63 = vadd.s32 1, %v434_v61 }
 0x11b   :  { %vm188_vm8 = vc.u32 %v431_v59, %v433_v60  ;;  %v187_v13 = vadd.s32 %v433_v60, %v431_v59 }
 0x11c   :  { %v190_v1 = vsel %vm188_vm8, %v189_v63, %v434_v61 }
 0x11d   :  { %v191_v2 = vadd.s32 %v190_v1, %v186_v0 }
 0x11f   :  { %v192_v3 = vadd.s32 536870912, %v191_v2 }
 0x121   :  { %v193_v4 = vshrl.u32 %v192_v3, 30 }
 0x123   :  { %v194_v5 = vshll.u32 %v193_v4, 30  ;;  %v217_v26 = vsub.s32 4, %v193_v4 }
 0x125   :  { %v195_v6 = vsub.s32 %v191_v2, %v194_v5  ;;  %v218_v29 = vsel %vm133_vm10, %v217_v26, %v193_v4 }
 0x126   :  { %v220_v31 = vsel %vm132_vm11, 0, %v218_v29 }
 0x127   :  { %v197_v7 = vsub.s32 0, %v195_v6  ;;  %v224_v32 = vadd.s32 3, %v220_v31 }
 0x129   :  { %v254_v8 = vmin.u32 %v197_v7, %v195_v6  ;;  %v225_v33 = vand.u32 3, %v224_v32 }
 0x12b   :  { %v199_v9 = vclz %v254_v8  ;;  %vm230_vm12 = vcmp.eq.s32.totalorder %v225_v33, 2  ;;  %vm227_vm13 = vcmp.eq.s32.totalorder %v225_v33, 0  ;;  %vm226_vm14 = vcmp.lt.s32.totalorder %v225_v33, 2 }
 0x12d   :  { %v255_v10 = vadd.s32 4294967294, %v199_v9 }
 0x12f   :  { %vm256_vm9 = vcmp.lt.s32.totalorder %v255_v10, 0 }
 0x130   :  { %v202_v12 = vsel %vm256_vm9, 0, %v255_v10 }
 0x131   :  { %v203_v14 = vsub.s32 32, %v202_v12  ;;  %v207_v15 = vsub.s32 4294967266, %v202_v12  ;;  %v204_v16 = vshll.u32 %v195_v6, %v202_v12 }
 0x133   :  { %v205_v18 = vshrl.u32 %v187_v13, %v203_v14  ;;  %v208_v19 = vadd.s32 127, %v207_v15 }
 0x135   :  { %v206_v20 = vor.u32 %v205_v18, %v204_v16  ;;  %v209_v21 = vshll.u32 %v208_v19, 23 }
 0x137   :  { %v210_v22 = vor.u32 4788187, %v209_v21  ;;  %v213_v24 = vcvt.s32.f32 %v206_v20 }
 0x139   :  { %v211_v23 = vand.u32 2147483647, %v210_v22 }
 0x13b   :  { %v214_v25 = vmul.f32 %v213_v24, %v211_v23 }
 0x13d   :  { %v215_v27 = vxor.u32 2147483648, %v214_v25 }
 0x13f   :  { %v216_v28 = vsel %vm133_vm10, %v215_v27, %v214_v25 }
 0x140   :  { %v219_v30 = vsel %vm132_vm11, %v424_v11, %v216_v28 }
 0x141   :  { %288 = vcosq.f32 %v219_v30 }
 0x142   :  { %290 = vsinq.f32 %v219_v30 }
 0x14b   :  { %v289_v34 = vpop.eup %288 }
 0x14c   :  { %v291_v35 = vpop.eup %290  ;;  %v231_v36 = vxor.u32 2147483648, %v289_v34 }
 0x14d   :  { %v228_v37 = vxor.u32 2147483648, %v291_v35 }
 0x14e   :  { %v232_v38 = vsel %vm230_vm12, %v231_v36, %v291_v35 }
 0x14f   :  { %v229_v39 = vsel %vm227_vm13, %v289_v34, %v228_v37 }
 0x150   :  { %v233_v17 = vsel %vm226_vm14, %v229_v39, %v232_v38 }
 0x151   :  { %v234_v40 = vsel %vm223_vm15, nan, %v233_v17 }
 0x152   :  { %235 = vst [vmem:[#allocation7] sm:$0xff] %v234_v40 }
 0x153   :  { %347 = shalt.err (!%p344_p6)
}
 0x154   :  { %s348_s10 = scalar_lea.hbm %s459_s2, 128 }
 0x155   :  { %p349_p7 = scmp.ne.s32.totalorder %s459_s2, %s348_s10  ;;  %p352_p8 = scmp.lt.u32.totalorder %s348_s10, %s459_s2 }
 0x157   :  { %p354_p9 = pnand %p352_p8, %p349_p7 }
 0x159   :  { %357 = shalt.err (!%p354_p9)
}
 0x15a   :  { %245 = dma.vmem_to_hbm [thread:$0]  %s243_s6, 128, %s459_s2, [#allocation4]  }
 0x15b   :  { %362 = dma.done.wait [#allocation4], 128  }
 0x15c   :  { %363 = vsyncadd [#allocation4], 4294967168 }
 0x15d   :  { %249 = vsyncpa [#allocation3], 1 }
 0x15e   :  { %250 = vsyncpa [#allocation6], 1 }
 0x15f   :  { %251 = vsyncpa [#allocation4], 1 }

</bundles_post_ra>
